<compile_context>
chip_gen: v7x
topology: tpu7x:2x2x1
jax: 0.10.0
libtpu: 0.0.40
codegen_flags: <defaults>
</compile_context>

<pallas_src>
import jax
import jax.numpy as jnp
from jax.experimental import pallas as pl
from jax.experimental.pallas import tpu as pltpu

IN_DIM = 4
HID = 100
OUT_DIM = 6
HID_PAD = 128   # lane-dense hidden width
OUT_PAD = 8     # narrow output block (== full array last dim -> legal BlockSpec)


def _round_up(n, m):
    return ((n + m - 1) // m) * m


def _cdiv(a, b):
    return -(-a // b)


def mlp_kernel(x_ref, w1_ref, b1_ref, w2_ref, b2_ref, w3_ref, b3_ref,
               w4_ref, b4_ref, o_ref):
    x = x_ref[...]            # (tile_b, 4)  f32
    w1 = w1_ref[...]          # (4, 128)     f32

    # fc1 + relu on the VPU: K=4 would fill only 4/128 of the MXU depth, so
    # replace that near-empty MXU pass with 4 broadcast FMAs, seeded with b1.
    h = b1_ref[...] + x[:, 0:1] * w1[0:1, :]
    h = h + x[:, 1:2] * w1[1:2, :]
    h = h + x[:, 2:3] * w1[2:3, :]
    h = h + x[:, 3:4] * w1[3:4, :]
    h = jnp.maximum(h, 0.0)                                   # (tile_b, 128) f32

    # fc2 + relu: bf16 MXU matmul, f32 accumulation; elementwise math in f32.
    h = jnp.dot(h.astype(jnp.bfloat16), w2_ref[...],
                preferred_element_type=jnp.float32)
    h = jnp.maximum(h + b2_ref[...], 0.0)

    # fc3 + relu
    h = jnp.dot(h.astype(jnp.bfloat16), w3_ref[...],
                preferred_element_type=jnp.float32)
    h = jnp.maximum(h + b3_ref[...], 0.0)

    # fc4 (no activation); padded output columns are exactly zero.
    h = jnp.dot(h.astype(jnp.bfloat16), w4_ref[...],
                preferred_element_type=jnp.float32)           # (tile_b, 8) f32
    o_ref[...] = (h + b4_ref[...]).astype(o_ref.dtype)


def network_forward(x, params, *, tile_b=4096):
    """x: (B, 4) float32. Returns (B, 6) float32."""
    B = x.shape[0]
    assert x.shape[1] == IN_DIM

    # Balanced batch tiles: 8-sublane aligned, capped at tile_b, chosen so the
    # padded batch wastes < 8 rows (e.g. B=10000, cap 4096 -> 3 tiles of 3336).
    tile_b_max = max(8, _round_up(tile_b, 8))
    b8 = _round_up(B, 8)
    n_steps = _cdiv(b8, tile_b_max)
    tile_b = _round_up(_cdiv(b8, n_steps), 8)
    b_pad = n_steps * tile_b
    if b_pad != B:
        x = jnp.pad(x, ((0, b_pad - B), (0, 0)))

    w1, b1 = params["w1"], params["b1"]
    w2, b2 = params["w2"], params["b2"]
    w3, b3 = params["w3"], params["b3"]
    w4, b4 = params["w4"], params["b4"]

    def batch_spec(cols):
        # Tiles the batch dimension; streamed (double-buffered) across steps.
        return pl.BlockSpec((tile_b, cols), lambda i: (i, 0))

    def resident_spec(arr):
        # Same block index every step -> stays resident in VMEM, no re-DMA.
        return pl.BlockSpec(arr.shape, lambda i: (0, 0))

    weight_bytes = sum(int(a.size) * a.dtype.itemsize
                       for a in (w1, b1, w2, b2, w3, b3, w4, b4))
    flops = 2 * b_pad * (IN_DIM * HID_PAD
                         + HID_PAD * HID_PAD
                         + HID_PAD * HID_PAD
                         + HID_PAD * OUT_PAD)
    bytes_accessed = b_pad * (IN_DIM * 4 + OUT_PAD * 4) + weight_bytes

    out_pad = pl.pallas_call(
        mlp_kernel,
        out_shape=jax.ShapeDtypeStruct((b_pad, OUT_PAD), jnp.float32),
        grid=(n_steps,),
        in_specs=[
            batch_spec(IN_DIM),
            resident_spec(w1), resident_spec(b1),
            resident_spec(w2), resident_spec(b2),
            resident_spec(w3), resident_spec(b3),
            resident_spec(w4), resident_spec(b4),
        ],
        out_specs=batch_spec(OUT_PAD),
        compiler_params=pltpu.CompilerParams(
            dimension_semantics=("parallel",),
            vmem_limit_bytes=32 * 1024 * 1024,
        ),
        cost_estimate=pl.CostEstimate(
            flops=int(flops),
            transcendentals=0,
            bytes_accessed=int(bytes_accessed),
        ),
    )(x, w1, b1, w2, b2, w3, b3, w4, b4)

    # Cheap: only 32 B/row of padded output remain to be sliced.
    return out_pad[:B, :OUT_DIM]


def init_params(key):
    """f32 params matching nn.Linear init, stored transposed and zero-padded
    (padding is exactly neutral)."""
    ks = jax.random.split(key, 8)

    def linear(kw, kb, fan_in, fan_out, pad_in, pad_out):
        bound = float(fan_in) ** -0.5
        w = jax.random.uniform(kw, (fan_in, fan_out), jnp.float32, -bound, bound)
        b = jax.random.uniform(kb, (1, fan_out), jnp.float32, -bound, bound)
        w = jnp.pad(w, ((0, pad_in - fan_in), (0, pad_out - fan_out)))
        b = jnp.pad(b, ((0, 0), (0, pad_out - fan_out)))
        return w, b

    w1, b1 = linear(ks[0], ks[1], IN_DIM, HID, IN_DIM, HID_PAD)
    w2, b2 = linear(ks[2], ks[3], HID, HID, HID_PAD, HID_PAD)
    w3, b3 = linear(ks[4], ks[5], HID, HID, HID_PAD, HID_PAD)
    w4, b4 = linear(ks[6], ks[7], HID, OUT_DIM, HID_PAD, OUT_PAD)
    return {"w1": w1, "b1": b1, "w2": w2, "b2": b2,
            "w3": w3, "b3": b3, "w4": w4, "b4": b4}


def to_kernel_params(p):
    """Kernel params: 128-deep matmul weights in bf16 (MXU native rate);
    fc1 weight and all biases stay f32 (used on the f32 VPU path)."""
    kp = dict(p)
    for name in ("w2", "w3", "w4"):
        kp[name] = p[name].astype(jnp.bfloat16)
    return kp


def reference_forward_f32(x, p):
    # Pure-f32 reference == the original torch module's math (padding cols are
    # zero, sliced off).
    h = jnp.maximum(x @ p["w1"] + p["b1"], 0.0)
    h = jnp.maximum(h @ p["w2"] + p["b2"], 0.0)
    h = jnp.maximum(h @ p["w3"] + p["b3"], 0.0)
    return (h @ p["w4"] + p["b4"])[:, :OUT_DIM]


def reference_forward_mixed(x, kp):
    # Same dtypes/accumulation as the kernel (bf16 matmul inputs, f32 acc).
    h = jnp.maximum(x @ kp["w1"] + kp["b1"], 0.0)
    h = jnp.dot(h.astype(jnp.bfloat16), kp["w2"], preferred_element_type=jnp.float32)
    h = jnp.maximum(h + kp["b2"], 0.0)
    h = jnp.dot(h.astype(jnp.bfloat16), kp["w3"], preferred_element_type=jnp.float32)
    h = jnp.maximum(h + kp["b3"], 0.0)
    h = jnp.dot(h.astype(jnp.bfloat16), kp["w4"], preferred_element_type=jnp.float32)
    return (h + kp["b4"])[:, :OUT_DIM]


if __name__ == "__main__":
    key = jax.random.PRNGKey(0)
    k_params, k_x1, k_x2, k_x3 = jax.random.split(key, 4)
    params_f32 = init_params(k_params)
    kparams = to_kernel_params(params_f32)

    def check(x, tile_b=4096):
        out = jax.block_until_ready(network_forward(x, kparams, tile_b=tile_b))
        assert out.shape == (x.shape[0], OUT_DIM)
        # Kernel vs same-precision pure-JAX math (tight).
        ref_mixed = reference_forward_mixed(x, kparams)
        assert jnp.allclose(out, ref_mixed, atol=1e-3, rtol=1e-3)
        # Kernel vs full-f32 original-module math (bf16 matmul tolerance).
        ref_f32 = reference_forward_f32(x, params_f32)
        assert jnp.allclose(out, ref_f32, atol=3e-2, rtol=3e-2)

    # Small single-tile check.
    check(jax.random.normal(k_x1, (8, IN_DIM), jnp.float32))
    # Batch-padding path (non-multiple-of-8 batch).
    check(jax.random.normal(k_x2, (1000, IN_DIM), jnp.float32))
    # Multi-step grid (exercises streamed x/out + VMEM-resident weights).
    check(jax.random.normal(k_x3, (600, IN_DIM), jnp.float32), tile_b=256)

    print("KERNEL_OK")
</pallas_src>

<mosaic_0001>
module attributes {stable_mosaic.version = 11 : i64} {
  func.func @mlp_kernel(%arg0: i32, %arg1: memref<8x4xf32, #tpu.memory_space<vmem>>, %arg2: memref<4x128xf32, #tpu.memory_space<vmem>>, %arg3: memref<1x128xf32, #tpu.memory_space<vmem>>, %arg4: memref<128x128xbf16, #tpu.memory_space<vmem>>, %arg5: memref<1x128xf32, #tpu.memory_space<vmem>>, %arg6: memref<128x128xbf16, #tpu.memory_space<vmem>>, %arg7: memref<1x128xf32, #tpu.memory_space<vmem>>, %arg8: memref<128x8xbf16, #tpu.memory_space<vmem>>, %arg9: memref<1x8xf32, #tpu.memory_space<vmem>>, %arg10: memref<8x8xf32, #tpu.memory_space<vmem>>) attributes {dimension_semantics = [#tpu.dimension_semantics<parallel>], iteration_bounds = array<i64: 1>, scalar_prefetch = 0 : i64, scratch_operands = 0 : i64, tpu.core_type = #tpu.core_type<tc>, window_params = [{transform_indices = @transform_0, window_bounds = array<i64: 8, 4>}, {pipeline_mode = #tpu.pipeline_mode<synchronous>, transform_indices = @transform_1, window_bounds = array<i64: 4, 128>}, {pipeline_mode = #tpu.pipeline_mode<synchronous>, transform_indices = @transform_2, window_bounds = array<i64: 1, 128>}, {pipeline_mode = #tpu.pipeline_mode<synchronous>, transform_indices = @transform_3, window_bounds = array<i64: 128, 128>}, {pipeline_mode = #tpu.pipeline_mode<synchronous>, transform_indices = @transform_4, window_bounds = array<i64: 1, 128>}, {pipeline_mode = #tpu.pipeline_mode<synchronous>, transform_indices = @transform_5, window_bounds = array<i64: 128, 128>}, {pipeline_mode = #tpu.pipeline_mode<synchronous>, transform_indices = @transform_6, window_bounds = array<i64: 1, 128>}, {pipeline_mode = #tpu.pipeline_mode<synchronous>, transform_indices = @transform_7, window_bounds = array<i64: 128, 8>}, {pipeline_mode = #tpu.pipeline_mode<synchronous>, transform_indices = @transform_8, window_bounds = array<i64: 1, 8>}, {transform_indices = @transform_9, window_bounds = array<i64: 8, 8>}]} {
    %c0 = arith.constant 0 : index
    %c0_0 = arith.constant 0 : index
    %0 = vector.load %arg1[%c0, %c0_0] : memref<8x4xf32, #tpu.memory_space<vmem>>, vector<8x4xf32>
    %c0_1 = arith.constant 0 : index
    %c0_2 = arith.constant 0 : index
    %1 = vector.load %arg2[%c0_1, %c0_2] : memref<4x128xf32, #tpu.memory_space<vmem>>, vector<4x128xf32>
    %c0_3 = arith.constant 0 : index
    %c0_4 = arith.constant 0 : index
    %2 = vector.load %arg3[%c0_3, %c0_4] : memref<1x128xf32, #tpu.memory_space<vmem>>, vector<1x128xf32>
    %3 = vector.extract_strided_slice %0 {offsets = [0, 0], sizes = [8, 1], strides = [1, 1]} : vector<8x4xf32> to vector<8x1xf32>
    %4 = vector.extract_strided_slice %1 {offsets = [0, 0], sizes = [1, 128], strides = [1, 1]} : vector<4x128xf32> to vector<1x128xf32>
    %5 = vector.broadcast %3 : vector<8x1xf32> to vector<8x128xf32>
    %6 = vector.broadcast %4 : vector<1x128xf32> to vector<8x128xf32>
    %7 = arith.mulf %5, %6 : vector<8x128xf32>
    %8 = vector.broadcast %2 : vector<1x128xf32> to vector<8x128xf32>
    %9 = arith.addf %8, %7 : vector<8x128xf32>
    %10 = vector.extract_strided_slice %0 {offsets = [0, 1], sizes = [8, 1], strides = [1, 1]} : vector<8x4xf32> to vector<8x1xf32>
    %11 = vector.extract_strided_slice %1 {offsets = [1, 0], sizes = [1, 128], strides = [1, 1]} : vector<4x128xf32> to vector<1x128xf32>
    %12 = vector.broadcast %10 : vector<8x1xf32> to vector<8x128xf32>
    %13 = vector.broadcast %11 : vector<1x128xf32> to vector<8x128xf32>
    %14 = arith.mulf %12, %13 : vector<8x128xf32>
    %15 = arith.addf %9, %14 : vector<8x128xf32>
    %16 = vector.extract_strided_slice %0 {offsets = [0, 2], sizes = [8, 1], strides = [1, 1]} : vector<8x4xf32> to vector<8x1xf32>
    %17 = vector.extract_strided_slice %1 {offsets = [2, 0], sizes = [1, 128], strides = [1, 1]} : vector<4x128xf32> to vector<1x128xf32>
    %18 = vector.broadcast %16 : vector<8x1xf32> to vector<8x128xf32>
    %19 = vector.broadcast %17 : vector<1x128xf32> to vector<8x128xf32>
    %20 = arith.mulf %18, %19 : vector<8x128xf32>
    %21 = arith.addf %15, %20 : vector<8x128xf32>
    %22 = vector.extract_strided_slice %0 {offsets = [0, 3], sizes = [8, 1], strides = [1, 1]} : vector<8x4xf32> to vector<8x1xf32>
    %23 = vector.extract_strided_slice %1 {offsets = [3, 0], sizes = [1, 128], strides = [1, 1]} : vector<4x128xf32> to vector<1x128xf32>
    %24 = vector.broadcast %22 : vector<8x1xf32> to vector<8x128xf32>
    %25 = vector.broadcast %23 : vector<1x128xf32> to vector<8x128xf32>
    %26 = arith.mulf %24, %25 : vector<8x128xf32>
    %27 = arith.addf %21, %26 : vector<8x128xf32>
    %cst = arith.constant 0.000000e+00 : f32
    %28 = vector.broadcast %cst : f32 to vector<8x128xf32>
    %29 = arith.maximumf %27, %28 : vector<8x128xf32>
    %30 = arith.truncf %29 : vector<8x128xf32> to vector<8x128xbf16>
    %c0_5 = arith.constant 0 : index
    %c0_6 = arith.constant 0 : index
    %31 = vector.load %arg4[%c0_5, %c0_6] : memref<128x128xbf16, #tpu.memory_space<vmem>>, vector<128x128xbf16>
    %cst_7 = arith.constant dense<0.000000e+00> : vector<8x128xf32>
    %32 = tpu.matmul %30, %31, %cst_7 {dimension_numbers = #tpu.dot_dimension_numbers<[1], [0], [0], [1], [0, 0, 1, 1], [], []>} : vector<8x128xbf16>, vector<128x128xbf16>, vector<8x128xf32> -> vector<8x128xf32>
    %c0_8 = arith.constant 0 : index
    %c0_9 = arith.constant 0 : index
    %33 = vector.load %arg5[%c0_8, %c0_9] : memref<1x128xf32, #tpu.memory_space<vmem>>, vector<1x128xf32>
    %34 = vector.broadcast %33 : vector<1x128xf32> to vector<8x128xf32>
    %35 = arith.addf %32, %34 : vector<8x128xf32>
    %cst_10 = arith.constant 0.000000e+00 : f32
    %36 = vector.broadcast %cst_10 : f32 to vector<8x128xf32>
    %37 = arith.maximumf %35, %36 : vector<8x128xf32>
    %38 = arith.truncf %37 : vector<8x128xf32> to vector<8x128xbf16>
    %c0_11 = arith.constant 0 : index
    %c0_12 = arith.constant 0 : index
    %39 = vector.load %arg6[%c0_11, %c0_12] : memref<128x128xbf16, #tpu.memory_space<vmem>>, vector<128x128xbf16>
    %cst_13 = arith.constant dense<0.000000e+00> : vector<8x128xf32>
    %40 = tpu.matmul %38, %39, %cst_13 {dimension_numbers = #tpu.dot_dimension_numbers<[1], [0], [0], [1], [0, 0, 1, 1], [], []>} : vector<8x128xbf16>, vector<128x128xbf16>, vector<8x128xf32> -> vector<8x128xf32>
    %c0_14 = arith.constant 0 : index
    %c0_15 = arith.constant 0 : index
    %41 = vector.load %arg7[%c0_14, %c0_15] : memref<1x128xf32, #tpu.memory_space<vmem>>, vector<1x128xf32>
    %42 = vector.broadcast %41 : vector<1x128xf32> to vector<8x128xf32>
    %43 = arith.addf %40, %42 : vector<8x128xf32>
    %cst_16 = arith.constant 0.000000e+00 : f32
    %44 = vector.broadcast %cst_16 : f32 to vector<8x128xf32>
    %45 = arith.maximumf %43, %44 : vector<8x128xf32>
    %46 = arith.truncf %45 : vector<8x128xf32> to vector<8x128xbf16>
    %c0_17 = arith.constant 0 : index
    %c0_18 = arith.constant 0 : index
    %47 = vector.load %arg8[%c0_17, %c0_18] : memref<128x8xbf16, #tpu.memory_space<vmem>>, vector<128x8xbf16>
    %cst_19 = arith.constant dense<0.000000e+00> : vector<8x8xf32>
    %48 = tpu.matmul %46, %47, %cst_19 {dimension_numbers = #tpu.dot_dimension_numbers<[1], [0], [0], [1], [0, 0, 1, 1], [], []>} : vector<8x128xbf16>, vector<128x8xbf16>, vector<8x8xf32> -> vector<8x8xf32>
    %c0_20 = arith.constant 0 : index
    %c0_21 = arith.constant 0 : index
    %49 = vector.load %arg9[%c0_20, %c0_21] : memref<1x8xf32, #tpu.memory_space<vmem>>, vector<1x8xf32>
    %50 = vector.broadcast %49 : vector<1x8xf32> to vector<8x8xf32>
    %51 = arith.addf %48, %50 : vector<8x8xf32>
    %c0_22 = arith.constant 0 : index
    %c0_23 = arith.constant 0 : index
    %52 = vector.load %arg10[%c0_22, %c0_23] : memref<8x8xf32, #tpu.memory_space<vmem>>, vector<8x8xf32>
    tpu.vector_store %arg10[%c0_22, %c0_23], %51 {strides = array<i32>} : memref<8x8xf32, #tpu.memory_space<vmem>>, vector<8x8xf32>,
    return
  }
  func.func @transform_0(%arg0: i32) -> (i32, i32) {
    %c0_i32 = arith.constant 0 : i32
    %c0_i32_0 = arith.constant 0 : i32
    return %arg0, %c0_i32 : i32, i32
  }
  func.func @transform_1(%arg0: i32) -> (i32, i32) {
    %c0_i32 = arith.constant 0 : i32
    %c0_i32_0 = arith.constant 0 : i32
    %c0_i32_1 = arith.constant 0 : i32
    return %c0_i32, %c0_i32_0 : i32, i32
  }
  func.func @transform_2(%arg0: i32) -> (i32, i32) {
    %c0_i32 = arith.constant 0 : i32
    %c0_i32_0 = arith.constant 0 : i32
    %c0_i32_1 = arith.constant 0 : i32
    return %c0_i32, %c0_i32_0 : i32, i32
  }
  func.func @transform_3(%arg0: i32) -> (i32, i32) {
    %c0_i32 = arith.constant 0 : i32
    %c0_i32_0 = arith.constant 0 : i32
    %c0_i32_1 = arith.constant 0 : i32
    return %c0_i32, %c0_i32_0 : i32, i32
  }
  func.func @transform_4(%arg0: i32) -> (i32, i32) {
    %c0_i32 = arith.constant 0 : i32
    %c0_i32_0 = arith.constant 0 : i32
    %c0_i32_1 = arith.constant 0 : i32
    return %c0_i32, %c0_i32_0 : i32, i32
  }
  func.func @transform_5(%arg0: i32) -> (i32, i32) {
    %c0_i32 = arith.constant 0 : i32
    %c0_i32_0 = arith.constant 0 : i32
    %c0_i32_1 = arith.constant 0 : i32
    return %c0_i32, %c0_i32_0 : i32, i32
  }
  func.func @transform_6(%arg0: i32) -> (i32, i32) {
    %c0_i32 = arith.constant 0 : i32
    %c0_i32_0 = arith.constant 0 : i32
    %c0_i32_1 = arith.constant 0 : i32
    return %c0_i32, %c0_i32_0 : i32, i32
  }
  func.func @transform_7(%arg0: i32) -> (i32, i32) {
    %c0_i32 = arith.constant 0 : i32
    %c0_i32_0 = arith.constant 0 : i32
    %c0_i32_1 = arith.constant 0 : i32
    return %c0_i32, %c0_i32_0 : i32, i32
  }
  func.func @transform_8(%arg0: i32) -> (i32, i32) {
    %c0_i32 = arith.constant 0 : i32
    %c0_i32_0 = arith.constant 0 : i32
    %c0_i32_1 = arith.constant 0 : i32
    return %c0_i32, %c0_i32_0 : i32, i32
  }
  func.func @transform_9(%arg0: i32) -> (i32, i32) {
    %c0_i32 = arith.constant 0 : i32
    %c0_i32_0 = arith.constant 0 : i32
    return %arg0, %c0_i32 : i32, i32
  }
}

</mosaic_0001>

<bundles_post_ra>
// kernel: tpu_custom_call.1
= control target key start
LH: loop header
LB: loop body
LE: loop exit
PB: predicated region body
PF: predicated region fallthrough
CT: control target
= control target key end

     0   :  { %14 = vsyncpa [#allocation3], 0  ;;  %s836_s0 = inlined_call_operand.vmem [shape: f32[8,4], index: 0, kind: input, shape index: {}]   ;;  %s837_s1 = inlined_call_operand.vmem [shape: f32[4,128], index: 1, kind: input, shape index: {}]   ;;  %s838_s2 = inlined_call_operand.vmem [shape: f32[1,128], index: 2, kind: input, shape index: {}]   ;;  %s839_s3 = inlined_call_operand.vmem [shape: bf16[128,128], index: 3, kind: input, shape index: {}]   ;;  %s840_s4 = inlined_call_operand.vmem [shape: f32[1,128], index: 4, kind: input, shape index: {}]   ;;  %s841_s5 = inlined_call_operand.hbm [shape: bf16[128,128], index: 5, kind: input, shape index: {}]   ;;  %s842_s6 = inlined_call_operand.vmem [shape: f32[1,128], index: 6, kind: input, shape index: {}]   ;;  %s843_s7 = inlined_call_operand.vmem [shape: bf16[128,8], index: 7, kind: input, shape index: {}]   ;;  %s844_s8 = inlined_call_operand.vmem [shape: f32[1,8], index: 8, kind: input, shape index: {}]   ;;  %s845_s9 = inlined_call_operand.hbm [shape: f32[8,8], index: 9, kind: output, shape index: {}]  }
   0x1   :  { %15 = vsyncpa [#allocation4], 0  ;;  %s656_s30 = smov [#allocation2]   ;;  %s608_s13 = scalar_lea.hbm %s841_s5, 1024 }
   0x2   :  { %s31_s10 = sshll.u32 %s656_s30, 4  ;;  %p609_p0 = scmp.ne.s32.totalorder %s841_s5, %s608_s13  ;;  %s32_s10 = int_to_ptr.vmem [resolvable:$true] %s31_s10 }
   0x3   :  { %p612_p1 = scmp.lt.u32.totalorder %s608_s13, %s841_s5 }
   0x5   :  { %p614_p2 = pnand %p612_p1, %p609_p0 }
   0x7   :  { %617 = shalt.err (!%p614_p2)
}
   0x8   :  { %s618_s18 = scalar_lea.vmem %s32_s10, 1024  ;;  %p623_p4 = scmp.lt.s32.totalorder %s32_s10, %s32_s10 }
   0x9   :  { %p619_p3 = scmp.ne.s32.totalorder %s32_s10, %s618_s18  ;;  %p624_p5 = scmp.lt.s32.totalorder %s618_s18, %s618_s18 }
   0xb   :  { %p625_p6 = por %p624_p5, %p623_p4 }
   0xd   :  { %p626_p7 = pnand %p625_p6, %p619_p3 }
   0xf   :  { %629 = shalt.err (!%p626_p7)
}
  0x10   :  { %s657_s19 = smov 64   ;;  %s658_s20 = smov 4  }
  0x11   :  { %37 = dma.hbm_to_vmem [thread:$0]  %s841_s5, 1024, %s32_s10, [#allocation3], %s657_s19, %s657_s19, %s658_s20  }
  0x12   :  { %652 = dma.done.wait [#allocation3], 1024  }
  0x13   :  { %653 = vsyncadd [#allocation3], 4294966272  ;;  %v659_v0 = vmov 0   ;;  %v660_v1 = vmov 2   ;;  %v661_v2 = vmov 0.0   ;;  %v48_v3 = vld [vmem:[%s836_s0] sm:$0xff]  ;;  %v56_v20 = vlaneseq }
  0x14   :  { %579 = vset.pattern.permute.xlu0 %v659_v0  ;;  %581 = vset.pattern.permute.xlu1 %v660_v1  ;;  %v584_v4 = vld [vmem:[%s839_s3] sm:$0xff]   ;;  %v585_v5 = vld [vmem:[%s839_s3 + $0x8] sm:$0xff]   ;;  %v662_v6 = vmov 1   ;;  %v663_v7 = vmov 3   ;;  %v586_v8 = vld [vmem:[%s839_s3 + $0x10] sm:$0xff]   ;;  %vm664_vm0 = vmmov 0  }
  0x15   :  { %509 = vmatprep.subr.bf16.mxu0 %v661_v2  ;;  %529 = vmatprep.subr.bf16.mxu1 %v661_v2  ;;  %v587_v9 = vld [vmem:[%s839_s3 + $0x18] sm:$0xff]   ;;  %v588_v10 = vld [vmem:[%s839_s3 + $0x20] sm:$0xff]   ;;  %v589_v12 = vld [vmem:[%s839_s3 + $0x28] sm:$0xff]   ;;  %v57_v21 = vshrl.u32 %v56_v20, 7  ;;  %s665_s17 = smov [#allocation5]   ;;  %vm437_vm1 = vcmask 64512  }
  0x16   :  { %53 = vperm.xlu0 %579, %v48_v3   ;;  %79 = vperm.xlu1 %581, %v48_v3   ;;  %v592_v11 = vld [vmem:[#allocation2] sm:$0xff]   ;;  %v593_v13 = vld [vmem:[#allocation2 + $0x8] sm:$0xff]   ;;  %v590_v14 = vld [vmem:[%s839_s3 + $0x30] sm:$0xff]  }
  0x17   :  { %510 = vmatpush3.bf16.msra.mxu0 %v584_v4  ;;  %525 = vmatprep.mubr.msk.bf16.mxu0 %vm664_vm0, %v661_v2  ;;  %v594_v15 = vld [vmem:[#allocation2 + $0x10] sm:$0xff]   ;;  %v591_v16 = vld [vmem:[%s839_s3 + $0x38] sm:$0xff]   ;;  %v596_v18 = vld [vmem:[#allocation2 + $0x20] sm:$0xff]   ;;  %v58_v22 = vsub.s32 0, %v57_v21  ;;  %v74_v25 = vsub.s32 1, %v57_v21  ;;  %v84_v27 = vsub.s32 2, %v57_v21 }
  0x18   :  { %511 = vmatprep.subr.bf16.mxu0 %v661_v2  ;;  %545 = vmatprep.mubr.msk.bf16.mxu1 %vm664_vm0, %v661_v2  ;;  %v595_v17 = vld [vmem:[#allocation2 + $0x18] sm:$0xff]   ;;  %v597_v19 = vld [vmem:[#allocation2 + $0x28] sm:$0xff]   ;;  %v49_v23 = vld [vmem:[%s837_s1] sm:$0xf]  ;;  %v94_v29 = vsub.s32 3, %v57_v21  ;;  %s445_s3 = sshll.u32 %s665_s17, 4  ;;  %s446_s3 = int_to_ptr.vmem [resolvable:$true] %s445_s3 }
  0x19   :  { %530 = vmatpush3.bf16.msra.mxu1 %v592_v11  ;;  %v59_v24 = vrot.slane %v49_v23, %v58_v22  ;;  %v75_v31 = vrot.slane %v49_v23, %v74_v25  ;;  %v454_v32 = vld [vmem:[%s838_s2] ss:$0 sm:$0xff]  ;;  %v85_v33 = vrot.slane %v49_v23, %v84_v27  ;;  %v598_v46 = vld [vmem:[#allocation2 + $0x30] sm:$0xff]   ;;  %v599_v47 = vld [vmem:[#allocation2 + $0x38] sm:$0xff]   ;;  %p635_p9 = scmp.lt.s32.totalorder %s446_s3, %s446_s3 }
  0x1a   :  { %580 = vset.pattern.permute.xlu0 %v662_v6  ;;  %582 = vset.pattern.permute.xlu1 %v663_v7  ;;  %v95_v34 = vrot.slane %v49_v23, %v94_v29  ;;  %v600_v48 = vld [vmem:[%s843_s7] sm:$0xff]   ;;  %v601_v49 = vld [vmem:[%s843_s7 + $0x8] sm:$0xff]   ;;  %v602_v50 = vld [vmem:[%s843_s7 + $0x10] sm:$0xff]  }
  0x1b   :  { %69 = vperm.xlu0 %580, %v48_v3   ;;  %89 = vperm.xlu1 %582, %v48_v3   ;;  %v603_v51 = vld [vmem:[%s843_s7 + $0x18] sm:$0xff]   ;;  %v604_v52 = vld [vmem:[%s843_s7 + $0x20] sm:$0xff]   ;;  %v605_v53 = vld [vmem:[%s843_s7 + $0x28] sm:$0xff]  }
  0x1c   :  { %512 = vmatpush3.bf16.msra.mxu0 %v585_v5  ;;  %531 = vmatprep.subr.bf16.mxu1 %v661_v2  ;;  %v455_v54 = vld [vmem:[%s840_s4] ss:$0 sm:$0xff]  ;;  %v606_v62 = vld [vmem:[%s843_s7 + $0x30] sm:$0xff]   ;;  %v607_v63 = vld [vmem:[%s843_s7 + $0x38] sm:$0xff]  }
  0x1d   :  { %513 = vmatprep.subr.bf16.mxu0 %v661_v2  ;;  %532 = vmatpush3.bf16.msra.mxu1 %v593_v13  ;;  %v464_v0 = vld [vmem:[%s842_s6] ss:$0 sm:$0xff]  ;;  %s630_s6 = scalar_lea.vmem %s446_s3, 128 }
  0x1e   :  { %533 = vmatprep.subr.bf16.mxu1 %v661_v2  ;;  %p631_p8 = scmp.ne.s32.totalorder %s446_s3, %s630_s6  ;;  %p636_p10 = scmp.lt.s32.totalorder %s630_s6, %s630_s6 }
  0x1f   :  { %583 = vset.pattern.permute.xlu0 %v663_v7 }
  0x20   :  { %514 = vmatpush3.bf16.msra.mxu0 %v586_v8  ;;  %p637_p11 = por %p636_p10, %p635_p9 }
  0x21   :  { %515 = vmatprep.subr.bf16.mxu0 %v661_v2  ;;  %534 = vmatpush3.bf16.msra.mxu1 %v594_v15 }
  0x22   :  { %535 = vmatprep.subr.bf16.mxu1 %v661_v2  ;;  %p638_p12 = pnand %p637_p11, %p631_p8 }
  0x24   :  { %516 = vmatpush3.bf16.msra.mxu0 %v587_v9 }
  0x25   :  { %517 = vmatprep.subr.bf16.mxu0 %v661_v2  ;;  %536 = vmatpush3.bf16.msra.mxu1 %v595_v17 }
  0x26   :  { %537 = vmatprep.subr.bf16.mxu1 %v661_v2 }
  0x28   :  { %518 = vmatpush3.bf16.msra.mxu0 %v588_v10 }
  0x29   :  { %519 = vmatprep.subr.bf16.mxu0 %v661_v2  ;;  %538 = vmatpush3.bf16.msra.mxu1 %v596_v18 }
  0x2a   :  { %539 = vmatprep.subr.bf16.mxu1 %v661_v2 }
  0x2c   :  { %520 = vmatpush3.bf16.msra.mxu0 %v589_v12 }
  0x2d   :  { %521 = vmatprep.subr.bf16.mxu0 %v661_v2  ;;  %540 = vmatpush3.bf16.msra.mxu1 %v597_v19 }
  0x2e   :  { %541 = vmatprep.subr.bf16.mxu1 %v661_v2 }
  0x30   :  { %522 = vmatpush3.bf16.msra.mxu0 %v590_v14 }
  0x31   :  { %523 = vmatprep.subr.bf16.mxu0 %v661_v2  ;;  %542 = vmatpush3.bf16.msra.mxu1 %v598_v46 }
  0x32   :  { %543 = vmatprep.subr.bf16.mxu1 %v661_v2 }
  0x34   :  { %524 = vmatpush3.bf16.msra.mxu0 %v591_v16 }
  0x35   :  { %549 = vmatprep.subr.bf16.mxu0 %v661_v2  ;;  %544 = vmatpush3.bf16.msra.mxu1 %v599_v47 }
  0x95   :  { %v54_v26 = vpop.permute.xlu0 %53  ;;  %v80_v28 = vpop.permute.xlu1 %79 }
  0x96   :  { %v60_v30 = vmul.f32 %v59_v24, %v54_v26  ;;  %v86_v39 = vmul.f32 %v85_v33, %v80_v28 }
  0x98   :  { %v67_v37 = vadd.f32 %v454_v32, %v60_v30 }
  0x9a   :  { %v70_v35 = vpop.permute.xlu0 %69  ;;  %v90_v36 = vpop.permute.xlu1 %89 }
  0x9b   :  { %v76_v38 = vmul.f32 %v75_v31, %v70_v35  ;;  %v96_v41 = vmul.f32 %v95_v34, %v90_v36 }
  0x9d   :  { %v77_v40 = vadd.f32 %v76_v38, %v67_v37 }
  0x9f   :  { %v87_v42 = vadd.f32 %v86_v39, %v77_v40 }
  0xa1   :  { %v97_v43 = vadd.f32 %v96_v41, %v87_v42 }
  0xa3   :  { %v98_v44 = vmax.f32 %v97_v43, 0.0 }
  0xa5   :  { %v99_v45 = vpack.c.bf16 %v98_v44, %v98_v44 }
  0xa7   :  { %526 = vmatmul.mubr.bf16.vlgmr.msra.gmra.mrb[0].mxu0 %v99_v45 }
  0xa8   :  { %565 = vmatprep.mubr.msk.bf16.mxu0 %vm664_vm0, %v661_v2  ;;  %550 = vmatpush3.bf16.msra.mxu0 %v600_v48 }
  0xa9   :  { %551 = vmatprep.subr.bf16.mxu0 %v661_v2 }
  0xac   :  { %552 = vmatpush3.bf16.msra.mxu0 %v601_v49 }
  0xad   :  { %553 = vmatprep.subr.bf16.mxu0 %v661_v2 }
  0xb0   :  { %554 = vmatpush3.bf16.msra.mxu0 %v602_v50 }
  0xb1   :  { %555 = vmatprep.subr.bf16.mxu0 %v661_v2 }
  0xb4   :  { %556 = vmatpush3.bf16.msra.mxu0 %v603_v51 }
  0xb5   :  { %557 = vmatprep.subr.bf16.mxu0 %v661_v2 }
  0xb8   :  { %558 = vmatpush3.bf16.msra.mxu0 %v604_v52 }
  0xb9   :  { %559 = vmatprep.subr.bf16.mxu0 %v661_v2 }
  0xbc   :  { %560 = vmatpush3.bf16.msra.mxu0 %v605_v53 }
  0xbd   :  { %561 = vmatprep.subr.bf16.mxu0 %v661_v2 }
  0xc0   :  { %562 = vmatpush3.bf16.msra.mxu0 %v606_v62 }
  0xc1   :  { %563 = vmatprep.subr.bf16.mxu0 %v661_v2  ;;  %v473_v2 = vld [vmem:[%s844_s8] ss:$0 sm:$0xff] }
  0xc4   :  { %564 = vmatpush3.bf16.msra.mxu0 %v607_v63 }
 0x17a   :  { %v205_v55 = vpop.f32.mrb[0].mxu0 }
 0x17b   :  { %v206_v56 = vadd.f32 %v455_v54, %v205_v55  ;;  %v527_v57 = vpop.f32.mrb[1].mxu0 }
 0x17c   :  { %v208_v58 = vpop.f32.mrb[2].mxu0 }
 0x17d   :  { %v211_v59 = vmax.f32 %v206_v56, 0.0  ;;  %v528_v60 = vpop.f32.mrb[3].mxu0 }
 0x17f   :  { %v212_v61 = vpack.c.bf16 %v211_v59, %v211_v59 }
 0x181   :  { %546 = vmatmul.mubr.bf16.vlgmr.msra.gmra.mrb[0].mxu1 %v212_v61 }
 0x254   :  { %v318_v1 = vpop.f32.mrb[0].mxu1 }
 0x255   :  { %v319_v3 = vadd.f32 %v464_v0, %v318_v1  ;;  %v547_v4 = vpop.f32.mrb[1].mxu1 }
 0x256   :  { %v321_v5 = vpop.f32.mrb[2].mxu1 }
 0x257   :  { %v324_v6 = vmax.f32 %v319_v3, 0.0  ;;  %v548_v7 = vpop.f32.mrb[3].mxu1 }
 0x259   :  { %v325_v8 = vpack.c.bf16 %v324_v6, %v324_v6 }
 0x25b   :  { %566 = vmatmul.mubr.bf16.vlgmr.msra.gmra.mrb[4].mxu0 %v325_v8 }
 0x32e   :  { %v431_v9 = vpop.f32.mrb[4].mxu0 }
 0x32f   :  { %v432_v10 = vadd.f32 %v473_v2, %v431_v9  ;;  %v567_v11 = vpop.f32.mrb[5].mxu0 }
 0x330   :  { %v434_v12 = vpop.f32.mrb[6].mxu0 }
 0x331   :  { %v568_v13 = vpop.f32.mrb[7].mxu0  ;;  %438 = vst.msk [vmem:[#allocation5] sm:$0xff] %vm437_vm1, %v432_v10 }
 0x332   :  { %641 = shalt.err (!%p638_p12)
}
 0x333   :  { %s642_s8 = scalar_lea.hbm %s845_s9, 128 }
 0x334   :  { %p643_p13 = scmp.ne.s32.totalorder %s845_s9, %s642_s8  ;;  %p646_p0 = scmp.lt.u32.totalorder %s642_s8, %s845_s9 }
 0x336   :  { %p648_p1 = pnand %p646_p0, %p643_p13 }
 0x338   :  { %651 = shalt.err (!%p648_p1)
}
 0x339   :  { %448 = dma.vmem_to_hbm [thread:$0]  %s446_s3, 128, %s845_s9, [#allocation4]  }
 0x33a   :  { %654 = dma.done.wait [#allocation4], 128  }
 0x33b   :  { %655 = vsyncadd [#allocation4], 4294967168 }
 0x33c   :  { %452 = vsyncpa [#allocation3], 1 }
 0x33d   :  { %453 = vsyncpa [#allocation4], 1 }

</bundles_post_ra>
